<compile_context>
chip_gen: v6e
topology: v6e:2x2x1
jax: 0.10.0
libtpu: 0.0.40
codegen_flags: <defaults>
</compile_context>

<pallas_src>
import math

import jax
import jax.numpy as jnp
from jax.experimental import pallas as pl
from jax.experimental.pallas import tpu as pltpu


_SQRT_2_OVER_PI = math.sqrt(2.0 / math.pi)


def _gelu_tanh(x):
    # GELU(approximate='tanh'): 0.5*x*(1+tanh(sqrt(2/pi)*(x+0.044715*x^3)))
    return 0.5 * x * (1.0 + jnp.tanh(_SQRT_2_OVER_PI * (x + 0.044715 * x * x * x)))


# ---------------------------------------------------------------------------
# Kernels
# ---------------------------------------------------------------------------

def _mlp_resident_kernel(x_ref, w_fc_ref, b_fc_ref, w_proj_ref, b_proj_ref, o_ref):
    """1-D grid over row tiles; weights are VMEM-resident (constant index_map)."""
    x = x_ref[...].astype(w_fc_ref.dtype)               # in-register cast to MXU dtype
    h = jnp.dot(x, w_fc_ref[...], preferred_element_type=jnp.float32)
    h = _gelu_tanh(h + b_fc_ref[...])                    # f32 bias + GELU (VPU/EUP)
    o = jnp.dot(h.astype(w_proj_ref.dtype), w_proj_ref[...],
                preferred_element_type=jnp.float32)
    o_ref[...] = (o + b_proj_ref[...]).astype(o_ref.dtype)


def _mlp_stream_kernel(x_ref, w_fc_ref, b_fc_ref, w_proj_ref, b_proj_ref, o_ref,
                       acc_ref):
    """Fallback: FF (4C) streamed in chunks on the last ("arbitrary") grid axis,
    second matmul accumulated in an f32 VMEM scratch."""
    f = pl.program_id(1)

    @pl.when(f == 0)
    def _():
        acc_ref[...] = jnp.zeros_like(acc_ref)

    x = x_ref[...].astype(w_fc_ref.dtype)
    h = jnp.dot(x, w_fc_ref[...], preferred_element_type=jnp.float32)
    h = _gelu_tanh(h + b_fc_ref[...])
    acc_ref[...] += jnp.dot(h.astype(w_proj_ref.dtype), w_proj_ref[...],
                            preferred_element_type=jnp.float32)

    @pl.when(f == pl.num_programs(1) - 1)
    def _():
        o_ref[...] = (acc_ref[...] + b_proj_ref[...]).astype(o_ref.dtype)


# ---------------------------------------------------------------------------
# Tiling / VMEM helpers
# ---------------------------------------------------------------------------

def _round_up(x, m):
    return ((x + m - 1) // m) * m


def _vmem_budget_bytes():
    """Usable scoped-VMEM budget per TensorCore, with headroom for Mosaic."""
    cap = 64 * 1024 * 1024  # conservative default == v7x physical per-TC VMEM
    try:
        info = pltpu.get_tpu_info()
        c = getattr(info, "vmem_capacity_bytes", None)
        if c:
            cap = int(c)
    except Exception:
        pass
    if cap <= 64 * 1024 * 1024:
        # v7x-class: leave headroom for internal scratch.
        return max(cap - 16 * 1024 * 1024, cap // 2)
    # v5e/v6e-class (128 MiB physical): allow up to ~100 MiB scoped.
    return min(cap - 28 * 1024 * 1024, 100 * 1024 * 1024)


def _resident_need(TM, C, FF, x_b, w_b, out_b):
    return (2 * TM * C * x_b            # x tiles (double-buffered)
            + 2 * C * FF * w_b          # w_fc (buffer pair, DMA'd once)
            + 2 * FF * 4                # b_fc (f32)
            + 2 * FF * C * w_b          # w_proj
            + 2 * C * 4                 # b_proj
            + 2 * TM * C * out_b        # out tiles
            + TM * FF * 4)              # GELU intermediate (f32)


def _stream_need(TM, TF, C, x_b, w_b, out_b):
    return (2 * TM * C * x_b
            + 2 * C * TF * w_b
            + 2 * TF * 4
            + 2 * TF * C * w_b
            + 2 * C * 4
            + 2 * TM * C * out_b
            + TM * C * 4                # accumulator scratch
            + TM * TF * 4)              # GELU intermediate (f32)


def _choose_tm(M, target, fits):
    """Pick an 8-aligned row tile (or the full row count); pad rows if needed.
    Returns (TM, M_padded)."""
    target = max(8, target)
    if M <= target and fits(M):
        return M, M                      # full-dim block is always layout-legal
    start = (min(target, M) // 8) * 8
    for t in range(start, 7, -8):        # aligned divisors of M -> no padding
        if M % t == 0 and fits(t):
            return t, M
    for t in (512, 256, 128, 64, 32, 16, 8):   # pad rows up to aligned tile
        if t <= target and fits(t):
            return t, _round_up(M, t)
    return 8, _round_up(M, 8)


def _choose_tf(FF, target):
    """128-aligned FF chunk (or full FF)."""
    if FF <= target:
        return FF
    start = (min(target, FF) // 128) * 128
    for t in range(start, 127, -128):
        if FF % t == 0:
            return t
    return FF


# ---------------------------------------------------------------------------
# Wrapper
# ---------------------------------------------------------------------------

def gpt2_mlp(x, params, *, compute_dtype=jnp.bfloat16, out_dtype=None,
             tm_target=512, tf_target=512):
    """x: (B, T, C).  params: w_fc (C,4C), b_fc (1,4C), w_proj (4C,C), b_proj (1,C).

    compute_dtype: MXU operand dtype (bf16 recommended; accumulation stays f32).
    out_dtype: output dtype (defaults to x.dtype; pass bf16 to halve writeback).
    """
    B, T, C = x.shape
    FF = params["w_fc"].shape[1]
    M = B * T
    out_dtype = x.dtype if out_dtype is None else out_dtype

    x2 = x.reshape(M, C)                       # stays in its original dtype (f32)
    w_fc = params["w_fc"].astype(compute_dtype)
    w_proj = params["w_proj"].astype(compute_dtype)
    b_fc = params["b_fc"].astype(jnp.float32)
    b_proj = params["b_proj"].astype(jnp.float32)

    x_b = jnp.dtype(x2.dtype).itemsize
    w_b = jnp.dtype(compute_dtype).itemsize
    o_b = jnp.dtype(out_dtype).itemsize
    budget = _vmem_budget_bytes()

    resident_ok = _resident_need(8, C, FF, x_b, w_b, o_b) <= budget

    if resident_ok:
        # ---- primary path: weights VMEM-resident, 1-D grid over row tiles ----
        def fits(tm):
            return _resident_need(tm, C, FF, x_b, w_b, o_b) <= budget

        TM, Mp = _choose_tm(M, tm_target, fits)
        if Mp > M:
            x2 = jnp.pad(x2, ((0, Mp - M), (0, 0)))
        need = _resident_need(TM, C, FF, x_b, w_b, o_b)
        vmem_limit = int(min(budget, max(need + need // 4 + (2 << 20),
                                         16 * 1024 * 1024)))

        out = pl.pallas_call(
            _mlp_resident_kernel,
            grid=(Mp // TM,),
            in_specs=[
                pl.BlockSpec((TM, C), lambda i: (i, 0)),   # x row tile
                pl.BlockSpec((C, FF), lambda i: (0, 0)),   # w_fc (resident)
                pl.BlockSpec((1, FF), lambda i: (0, 0)),   # b_fc (resident)
                pl.BlockSpec((FF, C), lambda i: (0, 0)),   # w_proj (resident)
                pl.BlockSpec((1, C), lambda i: (0, 0)),    # b_proj (resident)
            ],
            out_specs=pl.BlockSpec((TM, C), lambda i: (i, 0)),
            out_shape=jax.ShapeDtypeStruct((Mp, C), out_dtype),
            compiler_params=pltpu.CompilerParams(
                dimension_semantics=("parallel",),
                vmem_limit_bytes=vmem_limit,
            ),
        )(x2, w_fc, b_fc, w_proj, b_proj)
    else:
        # ---- fallback: stream FF chunks, accumulate second matmul in f32 ----
        TF = _choose_tf(FF, tf_target)

        def fits(tm):
            return _stream_need(tm, TF, C, x_b, w_b, o_b) <= budget

        TM, Mp = _choose_tm(M, tm_target, fits)
        if Mp > M:
            x2 = jnp.pad(x2, ((0, Mp - M), (0, 0)))
        need = _stream_need(TM, TF, C, x_b, w_b, o_b)
        vmem_limit = int(min(budget, max(need + need // 4 + (2 << 20),
                                         16 * 1024 * 1024)))

        out = pl.pallas_call(
            _mlp_stream_kernel,
            grid=(Mp // TM, FF // TF),
            in_specs=[
                pl.BlockSpec((TM, C), lambda i, f: (i, 0)),   # x row tile
                pl.BlockSpec((C, TF), lambda i, f: (0, f)),   # w_fc FF chunk
                pl.BlockSpec((1, TF), lambda i, f: (0, f)),   # b_fc FF chunk
                pl.BlockSpec((TF, C), lambda i, f: (f, 0)),   # w_proj FF chunk
                pl.BlockSpec((1, C), lambda i, f: (0, 0)),    # b_proj (invariant)
            ],
            out_specs=pl.BlockSpec((TM, C), lambda i, f: (i, 0)),
            out_shape=jax.ShapeDtypeStruct((Mp, C), out_dtype),
            scratch_shapes=[pltpu.VMEM((TM, C), jnp.float32)],
            compiler_params=pltpu.CompilerParams(
                dimension_semantics=("parallel", "arbitrary"),
                vmem_limit_bytes=vmem_limit,
            ),
        )(x2, w_fc, b_fc, w_proj, b_proj)

    if out.shape[0] != M:
        out = out[:M]
    return out.reshape(B, T, C)


# ---------------------------------------------------------------------------
# Reference + test harness
# ---------------------------------------------------------------------------

def make_params(key, d_model):
    C = d_model
    ks = jax.random.split(key, 4)
    scale = 0.02
    f32 = jnp.float32
    # Linear weights stored as (in, out) == torch weight.T
    return {
        "w_fc": scale * jax.random.normal(ks[0], (C, 4 * C), f32),
        "b_fc": scale * jax.random.normal(ks[1], (1, 4 * C), f32),
        "w_proj": scale * jax.random.normal(ks[2], (4 * C, C), f32),
        "b_proj": scale * jax.random.normal(ks[3], (1, C), f32),
    }


def gpt2_mlp_ref(x, p):
    """Pure-JAX reference mirroring the PyTorch forward (eval mode, f32)."""
    h = x @ p["w_fc"] + p["b_fc"][0]
    h = 0.5 * h * (1.0 + jnp.tanh(_SQRT_2_OVER_PI * (h + 0.044715 * h ** 3)))
    h = h @ p["w_proj"] + p["b_proj"][0]
    return h  # dropout: identity in eval mode


if __name__ == "__main__":
    B, T, C = 2, 8, 32   # batch, seq, d_model  -> hidden 4C = 128
    key = jax.random.PRNGKey(0)
    kx, kp = jax.random.split(key)
    x = jax.random.normal(kx, (B, T, C), jnp.float32)
    params = make_params(kp, C)

    ref = gpt2_mlp_ref(x, params)

    # f32 compute: tight check of the kernel structure / tiling.
    out_f32 = jax.block_until_ready(gpt2_mlp(x, params, compute_dtype=jnp.float32))
    assert out_f32.shape == (B, T, C)
    assert jnp.allclose(out_f32, ref, atol=1e-5, rtol=1e-5), "f32 mismatch vs reference"

    # bf16 MXU operands (f32 accumulate): relaxed tolerance (deliberate precision trade).
    out_bf16 = jax.block_until_ready(gpt2_mlp(x, params, compute_dtype=jnp.bfloat16))
    assert out_bf16.shape == (B, T, C)
    assert jnp.allclose(out_bf16, ref, atol=3e-2, rtol=3e-2), "bf16 mismatch vs reference"

    print("KERNEL_OK")
</pallas_src>

<mosaic_0001>
module attributes {stable_mosaic.version = 11 : i64} {
  func.func @_mlp_resident_kernel(%arg0: i32, %arg1: memref<16x32xf32, #tpu.memory_space<vmem>>, %arg2: memref<32x128xf32, #tpu.memory_space<vmem>>, %arg3: memref<1x128xf32, #tpu.memory_space<vmem>>, %arg4: memref<128x32xf32, #tpu.memory_space<vmem>>, %arg5: memref<1x32xf32, #tpu.memory_space<vmem>>, %arg6: memref<16x32xf32, #tpu.memory_space<vmem>>) attributes {dimension_semantics = [#tpu.dimension_semantics<parallel>], iteration_bounds = array<i64: 1>, scalar_prefetch = 0 : i64, scratch_operands = 0 : i64, tpu.core_type = #tpu.core_type<tc>, window_params = [{transform_indices = @transform_0, window_bounds = array<i64: 16, 32>}, {pipeline_mode = #tpu.pipeline_mode<synchronous>, transform_indices = @transform_1, window_bounds = array<i64: 32, 128>}, {pipeline_mode = #tpu.pipeline_mode<synchronous>, transform_indices = @transform_2, window_bounds = array<i64: 1, 128>}, {pipeline_mode = #tpu.pipeline_mode<synchronous>, transform_indices = @transform_3, window_bounds = array<i64: 128, 32>}, {pipeline_mode = #tpu.pipeline_mode<synchronous>, transform_indices = @transform_4, window_bounds = array<i64: 1, 32>}, {transform_indices = @transform_5, window_bounds = array<i64: 16, 32>}]} {
    %c0 = arith.constant 0 : index
    %c0_0 = arith.constant 0 : index
    %0 = vector.load %arg1[%c0, %c0_0] : memref<16x32xf32, #tpu.memory_space<vmem>>, vector<16x32xf32>
    %c0_1 = arith.constant 0 : index
    %c0_2 = arith.constant 0 : index
    %1 = vector.load %arg2[%c0_1, %c0_2] : memref<32x128xf32, #tpu.memory_space<vmem>>, vector<32x128xf32>
    %cst = arith.constant dense<0.000000e+00> : vector<16x128xf32>
    %2 = tpu.matmul %0, %1, %cst {dimension_numbers = #tpu.dot_dimension_numbers<[1], [0], [0], [1], [0, 0, 1, 1], [], []>} : vector<16x32xf32>, vector<32x128xf32>, vector<16x128xf32> -> vector<16x128xf32>
    %c0_3 = arith.constant 0 : index
    %c0_4 = arith.constant 0 : index
    %3 = vector.load %arg3[%c0_3, %c0_4] : memref<1x128xf32, #tpu.memory_space<vmem>>, vector<1x128xf32>
    %4 = vector.broadcast %3 : vector<1x128xf32> to vector<16x128xf32>
    %5 = arith.addf %2, %4 : vector<16x128xf32>
    %cst_5 = arith.constant 5.000000e-01 : f32
    %6 = vector.broadcast %cst_5 : f32 to vector<16x128xf32>
    %7 = arith.mulf %6, %5 : vector<16x128xf32>
    %cst_6 = arith.constant 4.471500e-02 : f32
    %8 = vector.broadcast %cst_6 : f32 to vector<16x128xf32>
    %9 = arith.mulf %8, %5 : vector<16x128xf32>
    %10 = arith.mulf %9, %5 : vector<16x128xf32>
    %11 = arith.mulf %10, %5 : vector<16x128xf32>
    %12 = arith.addf %5, %11 : vector<16x128xf32>
    %cst_7 = arith.constant 0.797884583 : f32
    %13 = vector.broadcast %cst_7 : f32 to vector<16x128xf32>
    %14 = arith.mulf %13, %12 : vector<16x128xf32>
    %15 = math.tanh %14 : vector<16x128xf32>
    %cst_8 = arith.constant 1.000000e+00 : f32
    %16 = vector.broadcast %cst_8 : f32 to vector<16x128xf32>
    %17 = arith.addf %16, %15 : vector<16x128xf32>
    %18 = arith.mulf %7, %17 : vector<16x128xf32>
    %c0_9 = arith.constant 0 : index
    %c0_10 = arith.constant 0 : index
    %19 = vector.load %arg4[%c0_9, %c0_10] : memref<128x32xf32, #tpu.memory_space<vmem>>, vector<128x32xf32>
    %cst_11 = arith.constant dense<0.000000e+00> : vector<16x32xf32>
    %20 = tpu.matmul %18, %19, %cst_11 {dimension_numbers = #tpu.dot_dimension_numbers<[1], [0], [0], [1], [0, 0, 1, 1], [], []>} : vector<16x128xf32>, vector<128x32xf32>, vector<16x32xf32> -> vector<16x32xf32>
    %c0_12 = arith.constant 0 : index
    %c0_13 = arith.constant 0 : index
    %21 = vector.load %arg5[%c0_12, %c0_13] : memref<1x32xf32, #tpu.memory_space<vmem>>, vector<1x32xf32>
    %22 = vector.broadcast %21 : vector<1x32xf32> to vector<16x32xf32>
    %23 = arith.addf %20, %22 : vector<16x32xf32>
    %c0_14 = arith.constant 0 : index
    %c0_15 = arith.constant 0 : index
    %24 = vector.load %arg6[%c0_14, %c0_15] : memref<16x32xf32, #tpu.memory_space<vmem>>, vector<16x32xf32>
    tpu.vector_store %arg6[%c0_14, %c0_15], %23 {strides = array<i32>} : memref<16x32xf32, #tpu.memory_space<vmem>>, vector<16x32xf32>,
    return
  }
  func.func @transform_0(%arg0: i32) -> (i32, i32) {
    %c0_i32 = arith.constant 0 : i32
    %c0_i32_0 = arith.constant 0 : i32
    return %arg0, %c0_i32 : i32, i32
  }
  func.func @transform_1(%arg0: i32) -> (i32, i32) {
    %c0_i32 = arith.constant 0 : i32
    %c0_i32_0 = arith.constant 0 : i32
    %c0_i32_1 = arith.constant 0 : i32
    return %c0_i32, %c0_i32_0 : i32, i32
  }
  func.func @transform_2(%arg0: i32) -> (i32, i32) {
    %c0_i32 = arith.constant 0 : i32
    %c0_i32_0 = arith.constant 0 : i32
    %c0_i32_1 = arith.constant 0 : i32
    return %c0_i32, %c0_i32_0 : i32, i32
  }
  func.func @transform_3(%arg0: i32) -> (i32, i32) {
    %c0_i32 = arith.constant 0 : i32
    %c0_i32_0 = arith.constant 0 : i32
    %c0_i32_1 = arith.constant 0 : i32
    return %c0_i32, %c0_i32_0 : i32, i32
  }
  func.func @transform_4(%arg0: i32) -> (i32, i32) {
    %c0_i32 = arith.constant 0 : i32
    %c0_i32_0 = arith.constant 0 : i32
    %c0_i32_1 = arith.constant 0 : i32
    return %c0_i32, %c0_i32_0 : i32, i32
  }
  func.func @transform_5(%arg0: i32) -> (i32, i32) {
    %c0_i32 = arith.constant 0 : i32
    %c0_i32_0 = arith.constant 0 : i32
    return %arg0, %c0_i32 : i32, i32
  }
}

</mosaic_0001>

<bundles_post_ra>
// kernel: tpu_custom_call.1
= control target key start
LH: loop header
LB: loop body
LE: loop exit
PB: predicated region body
PF: predicated region fallthrough
CT: control target
= control target key end

     0   :  { %vm34_vm0 = vcmask 261120   ;;  %s465_s0 = inlined_call_operand.vmem [shape: f32[16,32], index: 0, kind: input, shape index: {}]   ;;  %s466_s1 = inlined_call_operand.vmem [shape: f32[32,128], index: 1, kind: input, shape index: {}]   ;;  %s467_s2 = inlined_call_operand.vmem [shape: f32[1,128], index: 2, kind: input, shape index: {}]   ;;  %s468_s3 = inlined_call_operand.vmem [shape: f32[128,32], index: 3, kind: input, shape index: {}]   ;;  %s469_s4 = inlined_call_operand.vmem [shape: f32[1,32], index: 4, kind: input, shape index: {}]   ;;  %s470_s5 = inlined_call_operand.hbm [shape: f32[16,32], index: 5, kind: output, shape index: {}]  }
   0x1   :  { %v26_v0 = vld [vmem:[%s466_s1 + $0x18] sm:$0xff]  ;;  %v25_v1 = vld [vmem:[%s466_s1 + $0x10] sm:$0xff]  ;;  %v21_v2 = vld [vmem:[%s465_s0] sm:$0xff] }
   0x2   :  { %278 = vmatprep.subr.mxu0 %v26_v0  ;;  %v24_v3 = vld [vmem:[%s466_s1 + $0x8] sm:$0xff]  ;;  %286 = vmatprep.mubr.msk.f32.mxu0 %vm34_vm0, %v21_v2 }
   0x3   :  { %279 = vmatpush3.msra.mxu0 %v26_v0 }
   0x4   :  { %10 = vsyncpa [#allocation3], 0  ;;  %280 = vmatprep.subr.mxu0 %v25_v1  ;;  %v23_v4 = vld [vmem:[%s466_s1] sm:$0xff]  ;;  %v22_v5 = vld [vmem:[%s465_s0 + $0x8] sm:$0xff]  ;;  %s353_s10 = smov [#allocation2]  }
   0x5   :  { %281 = vmatpush3.msra.mxu0 %v25_v1  ;;  %v149_v6 = vld [vmem:[%s468_s3 + $0x78] sm:$0xff]  ;;  %v148_v7 = vld [vmem:[%s468_s3 + $0x70] sm:$0xff]  ;;  %v147_v8 = vld [vmem:[%s468_s3 + $0x68] sm:$0xff]  ;;  %s239_s11 = sshll.u32 %s353_s10, 4  ;;  %s240_s11 = int_to_ptr.vmem [resolvable:$true] %s239_s11 }
   0x6   :  { %282 = vmatprep.subr.mxu0 %v24_v3  ;;  %289 = vmatprep.subr.mxu1 %v149_v6  ;;  %v146_v9 = vld [vmem:[%s468_s3 + $0x60] sm:$0xff]  ;;  %v145_v10 = vld [vmem:[%s468_s3 + $0x58] sm:$0xff]  ;;  %v144_v11 = vld [vmem:[%s468_s3 + $0x50] sm:$0xff]  ;;  %s331_s12 = scalar_lea.vmem %s240_s11, 256  ;;  %p336_p1 = scmp.lt.s32.totalorder %s240_s11, %s240_s11 }
   0x7   :  { %283 = vmatpush3.msra.mxu0 %v24_v3  ;;  %290 = vmatpush3.msra.mxu1 %v149_v6  ;;  %v143_v12 = vld [vmem:[%s468_s3 + $0x48] sm:$0xff]  ;;  %v142_v13 = vld [vmem:[%s468_s3 + $0x40] sm:$0xff]  ;;  %v141_v14 = vld [vmem:[%s468_s3 + $0x38] sm:$0xff]  ;;  %p332_p0 = scmp.ne.s32.totalorder %s240_s11, %s331_s12  ;;  %p337_p2 = scmp.lt.s32.totalorder %s331_s12, %s331_s12 }
   0x8   :  { %284 = vmatprep.subr.mxu0 %v23_v4  ;;  %291 = vmatprep.subr.mxu1 %v148_v7  ;;  %v140_v15 = vld [vmem:[%s468_s3 + $0x30] sm:$0xff]  ;;  %v139_v16 = vld [vmem:[%s468_s3 + $0x28] sm:$0xff]  ;;  %v138_v17 = vld [vmem:[%s468_s3 + $0x20] sm:$0xff] }
   0x9   :  { %285 = vmatpush3.msra.mxu0 %v23_v4  ;;  %292 = vmatpush3.msra.mxu1 %v148_v7  ;;  %v137_v18 = vld [vmem:[%s468_s3 + $0x18] sm:$0xff]  ;;  %v136_v19 = vld [vmem:[%s468_s3 + $0x10] sm:$0xff]  ;;  %v135_v20 = vld [vmem:[%s468_s3 + $0x8] sm:$0xff]  ;;  %p338_p3 = por %p337_p2, %p336_p1 }
   0xa   :  { %287 = vmatmul.mubr.msk.f32.vlgmr.msra.gmra.mxu0 %vm34_vm0, %v22_v5  ;;  %293 = vmatprep.subr.mxu1 %v147_v8  ;;  %v134_v21 = vld [vmem:[%s468_s3] sm:$0xff] }
   0xb   :  { %294 = vmatpush3.msra.mxu1 %v147_v8  ;;  %v250_v22 = vld [vmem:[%s467_s2] ss:$0 sm:$0xff]  ;;  %p339_p4 = pnand %p338_p3, %p332_p0 }
   0xc   :  { %295 = vmatprep.subr.mxu1 %v146_v9  ;;  %v253_v45 = vld [vmem:[%s469_s4] ss:$0 sm:$0xff] }
   0xd   :  { %296 = vmatpush3.msra.mxu1 %v146_v9 }
   0xe   :  { %297 = vmatprep.subr.mxu1 %v145_v10 }
   0xf   :  { %298 = vmatpush3.msra.mxu1 %v145_v10 }
  0x10   :  { %299 = vmatprep.subr.mxu1 %v144_v11 }
  0x11   :  { %300 = vmatpush3.msra.mxu1 %v144_v11 }
  0x12   :  { %301 = vmatprep.subr.mxu1 %v143_v12 }
  0x13   :  { %302 = vmatpush3.msra.mxu1 %v143_v12 }
  0x14   :  { %303 = vmatprep.subr.mxu1 %v142_v13 }
  0x15   :  { %304 = vmatpush3.msra.mxu1 %v142_v13 }
  0x16   :  { %305 = vmatprep.subr.mxu1 %v141_v14 }
  0x17   :  { %306 = vmatpush3.msra.mxu1 %v141_v14 }
  0x18   :  { %307 = vmatprep.subr.mxu1 %v140_v15 }
  0x19   :  { %308 = vmatpush3.msra.mxu1 %v140_v15 }
  0x1a   :  { %309 = vmatprep.subr.mxu1 %v139_v16 }
  0x1b   :  { %310 = vmatpush3.msra.mxu1 %v139_v16 }
  0x1c   :  { %311 = vmatprep.subr.mxu1 %v138_v17 }
  0x1d   :  { %312 = vmatpush3.msra.mxu1 %v138_v17 }
  0x1e   :  { %313 = vmatprep.subr.mxu1 %v137_v18 }
  0x1f   :  { %314 = vmatpush3.msra.mxu1 %v137_v18 }
  0x20   :  { %315 = vmatprep.subr.mxu1 %v136_v19 }
  0x21   :  { %316 = vmatpush3.msra.mxu1 %v136_v19 }
  0x22   :  { %317 = vmatprep.subr.mxu1 %v135_v20 }
  0x23   :  { %318 = vmatpush3.msra.mxu1 %v135_v20 }
  0x24   :  { %319 = vmatprep.subr.mxu1 %v134_v21 }
  0x25   :  { %320 = vmatpush3.msra.mxu1 %v134_v21 }
  0xca   :  { %v288_v23 = vpop.f32.mrf.mxu0 }
  0xcb   :  { %v113_v24 = vadd.f32 %v288_v23, %v250_v22 }
  0xcc   :  { %v107_v25 = vpop.f32.mrf.mxu0 }
  0xcd   :  { %v119_v26 = vmul.f32 0.044715, %v113_v24  ;;  %v108_v27 = vadd.f32 %v250_v22, %v107_v25  ;;  %v117_v42 = vmul.f32 0.5, %v113_v24 }
  0xcf   :  { %v121_v28 = vmul.f32 %v119_v26, %v113_v24  ;;  %v118_v29 = vmul.f32 0.044715, %v108_v27  ;;  %v116_v40 = vmul.f32 0.5, %v108_v27 }
  0xd1   :  { %v120_v30 = vmul.f32 %v118_v29, %v108_v27  ;;  %v123_v31 = vmul.f32 %v121_v28, %v113_v24 }
  0xd3   :  { %v122_v32 = vmul.f32 %v120_v30, %v108_v27  ;;  %v125_v33 = vadd.f32 %v123_v31, %v113_v24 }
  0xd5   :  { %v124_v34 = vadd.f32 %v122_v32, %v108_v27  ;;  %v127_v35 = vmul.f32 0.7978846, %v125_v33 }
  0xd7   :  { %v126_v36 = vmul.f32 0.7978846, %v124_v34  ;;  %327 = vtanh.f32 %v127_v35 }
  0xd9   :  { %329 = vtanh.f32 %v126_v36 }
  0xe4   :  { %v328_v37 = vpop.eup %327 }
  0xe5   :  { %v131_v39 = vadd.f32 1.0, %v328_v37 }
  0xe6   :  { %v330_v38 = vpop.eup %329 }
  0xe7   :  { %v130_v41 = vadd.f32 1.0, %v330_v38  ;;  %v133_v44 = vmul.f32 %v131_v39, %v117_v42 }
  0xe9   :  { %v132_v43 = vmul.f32 %v130_v41, %v116_v40 }
  0xeb   :  { %321 = vmatprep.mubr.f32.mxu1 %v132_v43 }
  0xec   :  { %322 = vmatmul.mubr.f32.vlgmr.msra.gmra.mxu1 %v133_v44 }
 0x1ac   :  { %v323_v46 = vpop.f32.mrf.mxu1 }
 0x1ad   :  { %v229_v47 = vadd.f32 %v323_v46, %v253_v45 }
 0x1ae   :  { %v223_v48 = vpop.f32.mrf.mxu1 }
 0x1af   :  { %233 = vst.msk [vmem:[#allocation2 + $0x8] sm:$0xff] %vm34_vm0, %v229_v47  ;;  %v224_v49 = vadd.f32 %v253_v45, %v223_v48 }
 0x1b1   :  { %232 = vst.msk [vmem:[#allocation2] sm:$0xff] %vm34_vm0, %v224_v49 }
 0x1b2   :  { %342 = shalt.err (!%p339_p4)
}
 0x1b3   :  { %s354_s13 = smov 128   ;;  %s355_s4 = smov 8  }
 0x1b4   :  { %245 = dma.vmem_to_hbm [thread:$0]  %s240_s11, 256, %s470_s5, [#allocation3], %s354_s13, %s354_s13, %s355_s4  }
 0x1b5   :  { %351 = dma.done.wait [#allocation3], 256  }
 0x1b6   :  { %352 = vsyncadd [#allocation3], 4294967040 }
 0x1b7   :  { %249 = vsyncpa [#allocation3], 1 }

</bundles_post_ra>
